<compile_context>
chip_gen: v7x
topology: tpu7x:2x2x1
jax: 0.10.0
libtpu: 0.0.40
codegen_flags: <defaults>
</compile_context>

<pallas_src>
import functools

import jax
import jax.numpy as jnp
import numpy as np
from jax import lax
from jax.experimental import pallas as pl
from jax.experimental.pallas import tpu as pltpu


LANE = 128              # fused hidden / output width (lane-dense)
CRITIC_OFFSET = 64      # lanes [64, 128) carry the critic branch
VALUE_LANE = CRITIC_OFFSET        # critic value lives in lane 64
ACTION_LANE = CRITIC_OFFSET + 1   # sampled action packed into lane 65


def _round_up(x, m):
    return ((x + m - 1) // m) * m


def _as_i32(x):
    """uint32 literal -> equivalent signed int32 constant."""
    x &= 0xFFFFFFFF
    return jnp.int32(x - (1 << 32) if x >= (1 << 31) else x)


# ----------------------------------------------------------------------------
# Fused kernel: actor+critic 3-layer MLP + in-kernel categorical sampling
# ----------------------------------------------------------------------------
def _fused_actor_critic_kernel(seed_ref, x_ref, w1_ref, w2_ref, w3_ref, b_ref,
                               slab_ref, *, action_dim, tile_b):
    b = b_ref[...]                                       # (3, LANE) f32

    # --- 3 lane-dense bf16 MXU matmuls, f32 accumulate / bias / tanh --------
    xb = x_ref[...].astype(jnp.bfloat16)                 # (TILE_B, obs_dim)
    h1 = jnp.tanh(
        jnp.dot(xb, w1_ref[...], preferred_element_type=jnp.float32) + b[0:1, :])
    h2 = jnp.tanh(
        jnp.dot(h1.astype(jnp.bfloat16), w2_ref[...],
                preferred_element_type=jnp.float32) + b[1:2, :])
    out = jnp.dot(h2.astype(jnp.bfloat16), w3_ref[...],
                  preferred_element_type=jnp.float32) + b[2:3, :]

    # --- Gumbel-max categorical sample over the first `action_dim` lanes ----
    shape = out.shape
    lane = lax.broadcasted_iota(jnp.int32, shape, 1)
    row = lax.broadcasted_iota(jnp.int32, shape, 0) + pl.program_id(0) * tile_b

    # Counter-based hash PRNG (pure int32 VPU ops -> lowers on TPU *and* the
    # CPU interpret fallback; no pltpu.prng_seed).  Hashing the global row index
    # decorrelates tiles and consecutive seeds.
    h = (row * _as_i32(0x9E3779B1)
         + lane * _as_i32(0x85EBCA6B)
         + seed_ref[0] * _as_i32(0xC2B2AE35))
    h = h ^ ((h >> 16) & jnp.int32(0xFFFF))
    h = h * _as_i32(0x7FEB352D)
    h = h ^ ((h >> 15) & jnp.int32(0x1FFFF))
    h = h * _as_i32(0x846CA68B)
    h = h ^ ((h >> 16) & jnp.int32(0xFFFF))

    u24 = (h & jnp.int32(0x00FFFFFF)).astype(jnp.float32)        # [0, 2^24)
    u = (u24 + 0.5) * jnp.float32(1.0 / 16777216.0)              # (0, 1)
    gumbel = -jnp.log(-jnp.log(u))
    scores = out + gumbel

    # Single-reduction index-packed argmax: order-preserving f32->i32 key,
    # low 7 bits replaced by (127 - lane), one cross-lane max, unpack.
    sb = lax.bitcast_convert_type(scores, jnp.int32)
    key = sb ^ ((sb >> 31) & jnp.int32(0x7FFFFFFF))              # monotone map
    packed = jnp.where(lane < action_dim,
                       (key & jnp.int32(~0x7F)) | (jnp.int32(127) - lane),
                       jnp.int32(-(1 << 31)))
    best = jnp.max(packed, axis=-1, keepdims=True)               # one XLU reduce
    action_f = (jnp.int32(127) - (best & jnp.int32(0x7F))).astype(jnp.float32)

    # Pack the action into spare lane 65 of the slab (exact for small ints),
    # eliminating the second output stream entirely.
    slab_ref[...] = jnp.where(lane == ACTION_LANE, action_f, out)


def _choose_tile(batch, tile_b_max):
    b8 = _round_up(max(batch, 1), 8)
    n_tiles = max(1, pl.cdiv(b8, tile_b_max))
    if b8 >= 16:
        n_tiles = max(n_tiles, 2)   # v7x: keep >= 2 grid steps for its 2 TCs
    return _round_up(pl.cdiv(b8, n_tiles), 8)


def fused_actor_critic_call(seed_i32, state, w1, w2, w3, b, action_dim,
                            tile_b_max=1024):
    batch, obs_dim = state.shape
    tb = _choose_tile(batch, tile_b_max)
    grid = (pl.cdiv(batch, tb),)     # partial last block is masked by Pallas

    kernel = functools.partial(_fused_actor_critic_kernel,
                               action_dim=action_dim, tile_b=tb)

    slab = pl.pallas_call(
        kernel,
        out_shape=jax.ShapeDtypeStruct((batch, LANE), jnp.float32),
        grid_spec=pltpu.PrefetchScalarGridSpec(
            num_scalar_prefetch=1,                    # seed lands in SMEM
            grid=grid,
            in_specs=[
                pl.BlockSpec((tb, obs_dim), lambda i, s: (i, 0)),     # state tile
                pl.BlockSpec((obs_dim, LANE), lambda i, s: (0, 0)),   # W1 (resident)
                pl.BlockSpec((LANE, LANE), lambda i, s: (0, 0)),      # W2 (resident)
                pl.BlockSpec((LANE, LANE), lambda i, s: (0, 0)),      # W3 (resident)
                pl.BlockSpec((3, LANE), lambda i, s: (0, 0)),         # biases
            ],
            out_specs=pl.BlockSpec((tb, LANE), lambda i, s: (i, 0)),  # fused slab
        ),
        compiler_params=pltpu.CompilerParams(
            dimension_semantics=("parallel",)),
    )(seed_i32, state, w1, w2, w3, b)
    return slab


# ----------------------------------------------------------------------------
# ActorCriticNet.forward equivalent
# ----------------------------------------------------------------------------
@functools.partial(jax.jit, static_argnames=("action_dim",))
def actor_critic_forward(seed, state, fused_params, *, action_dim):
    w1, w2, w3, b = fused_params
    seed_i32 = jnp.asarray(seed, jnp.int32).reshape(1)
    slab = fused_actor_critic_call(seed_i32, state, w1, w2, w3, b, action_dim)
    logits = slab[:, :action_dim]
    value = slab[:, VALUE_LANE]
    action = slab[:, ACTION_LANE].astype(jnp.int32)
    return action, value, logits


# ----------------------------------------------------------------------------
# Parameter init (orthogonal weights, zero bias) and fused packing
# ----------------------------------------------------------------------------
def _orthogonal(key, in_size, out_size, std):
    a = jax.random.normal(key, (max(in_size, out_size), min(in_size, out_size)),
                          dtype=jnp.float32)
    q, r = jnp.linalg.qr(a)
    q = q * jnp.sign(jnp.diagonal(r))
    if in_size < out_size:
        q = q.T
    return (std * q[:in_size, :out_size]).astype(jnp.float32)


def init_params(key, obs_dim, action_dim, actor_layers, critic_layers):
    keys = jax.random.split(key, 6)

    def build_head(ks, layers, final_out, final_std):
        sizes = [obs_dim] + list(layers)
        params = []
        for i, (ins, outs) in enumerate(zip(sizes[:-1], sizes[1:])):
            params.append((_orthogonal(ks[i], ins, outs, std=np.sqrt(2.0)),
                           jnp.zeros((1, outs), jnp.float32)))
        params.append((_orthogonal(ks[len(layers)], sizes[-1], final_out, final_std),
                       jnp.zeros((1, final_out), jnp.float32)))
        return params

    actor_params = build_head(keys[0:3], actor_layers, action_dim, 0.01)
    critic_params = build_head(keys[3:6], critic_layers, 1, 1.0)
    return actor_params, critic_params


def pack_fused_params(actor_params, critic_params, action_dim):
    # TODO(synk): kernel assumes exactly two hidden layers per head (the common
    # A2C config); arbitrary depths would need a packed-layer loop.
    (aw1, ab1), (aw2, ab2), (aw3, ab3) = [(np.asarray(w), np.asarray(bb))
                                          for (w, bb) in actor_params]
    (cw1, cb1), (cw2, cb2), (cw3, cb3) = [(np.asarray(w), np.asarray(bb))
                                          for (w, bb) in critic_params]
    obs_dim = aw1.shape[0]
    ha1, ha2 = aw1.shape[1], aw2.shape[1]
    hc1, hc2 = cw1.shape[1], cw2.shape[1]
    assert ha1 <= CRITIC_OFFSET and ha2 <= CRITIC_OFFSET
    assert hc1 <= LANE - CRITIC_OFFSET and hc2 <= LANE - CRITIC_OFFSET
    assert action_dim <= CRITIC_OFFSET
    assert aw3.shape[1] == action_dim and cw3.shape[1] == 1

    # Layer 1: [actor | critic] side-by-side.  Zero-padded lanes stay exactly 0
    # through tanh (bias 0), so the block-diagonal layers below stay exact.
    w1 = np.zeros((obs_dim, LANE), np.float32)
    w1[:, :ha1] = aw1
    w1[:, CRITIC_OFFSET:CRITIC_OFFSET + hc1] = cw1

    w2 = np.zeros((LANE, LANE), np.float32)
    w2[:ha1, :ha2] = aw2
    w2[CRITIC_OFFSET:CRITIC_OFFSET + hc1, CRITIC_OFFSET:CRITIC_OFFSET + hc2] = cw2

    w3 = np.zeros((LANE, LANE), np.float32)
    w3[:ha2, :action_dim] = aw3
    w3[CRITIC_OFFSET:CRITIC_OFFSET + hc2, VALUE_LANE] = cw3[:, 0]

    b = np.zeros((3, LANE), np.float32)
    b[0, :ha1] = ab1[0]
    b[0, CRITIC_OFFSET:CRITIC_OFFSET + hc1] = cb1[0]
    b[1, :ha2] = ab2[0]
    b[1, CRITIC_OFFSET:CRITIC_OFFSET + hc2] = cb2[0]
    b[2, :action_dim] = ab3[0]
    b[2, VALUE_LANE] = cb3[0, 0]

    # Weights stored in bf16 (MXU-native), biases in f32.
    return (jnp.asarray(w1, jnp.bfloat16), jnp.asarray(w2, jnp.bfloat16),
            jnp.asarray(w3, jnp.bfloat16), jnp.asarray(b, jnp.float32))


# ----------------------------------------------------------------------------
# Pure-JAX reference (per head, same bf16 matmul operands) for correctness
# ----------------------------------------------------------------------------
def _ref_head_bf16(x, params):
    h = x
    n = len(params)
    for i, (w, bb) in enumerate(params):
        z = jnp.dot(h.astype(jnp.bfloat16), jnp.asarray(w, jnp.bfloat16),
                    preferred_element_type=jnp.float32) + bb
        h = jnp.tanh(z) if i < n - 1 else z
    return h


if __name__ == "__main__":
    observation_shape = (4, 4)        # flattened -> 16 features
    action_dim = 6
    actor_layers = [64, 64]
    critic_layers = [64, 64]
    batch = 8

    obs_dim = int(np.prod(observation_shape))

    root = jax.random.PRNGKey(0)
    k_param, k_state = jax.random.split(root, 2)

    actor_params, critic_params = init_params(
        k_param, obs_dim, action_dim, actor_layers, critic_layers)
    fused = pack_fused_params(actor_params, critic_params, action_dim)

    # state: already-flattened observations (B, prod(observation_shape))
    state = jax.random.normal(k_state, (batch, obs_dim), dtype=jnp.float32)

    action, value, logits = actor_critic_forward(
        jnp.int32(1234), state, fused, action_dim=action_dim)
    jax.block_until_ready((action, value, logits))

    # Verify fused-kernel logits / value against a pure-JAX bf16-matmul reference.
    logits_ref = _ref_head_bf16(state, actor_params)
    value_ref = jnp.squeeze(_ref_head_bf16(state, critic_params), axis=-1)
    np.testing.assert_allclose(np.asarray(logits), np.asarray(logits_ref),
                               rtol=5e-3, atol=5e-3)
    np.testing.assert_allclose(np.asarray(value), np.asarray(value_ref),
                               rtol=5e-3, atol=5e-3)

    assert action.shape == (batch,)
    assert value.shape == (batch,)
    a_np = np.asarray(action)
    assert np.all(a_np >= 0) and np.all(a_np < action_dim)

    print("KERNEL_OK")
</pallas_src>

<mosaic_0001>
module attributes {stable_mosaic.version = 11 : i64} {
  func.func @_fused_actor_critic_kernel(%arg0: i32, %arg1: memref<1xi32, #tpu.memory_space<smem>>, %arg2: memref<8x16xf32, #tpu.memory_space<vmem>>, %arg3: memref<16x128xbf16, #tpu.memory_space<vmem>>, %arg4: memref<128x128xbf16, #tpu.memory_space<vmem>>, %arg5: memref<128x128xbf16, #tpu.memory_space<vmem>>, %arg6: memref<3x128xf32, #tpu.memory_space<vmem>>, %arg7: memref<8x128xf32, #tpu.memory_space<vmem>>) attributes {dimension_semantics = [#tpu.dimension_semantics<parallel>], iteration_bounds = array<i64: 1>, scalar_prefetch = 1 : i64, scratch_operands = 0 : i64, tpu.core_type = #tpu.core_type<tc>, window_params = [{transform_indices = @transform_0, window_bounds = array<i64: 8, 16>}, {pipeline_mode = #tpu.pipeline_mode<synchronous>, transform_indices = @transform_1, window_bounds = array<i64: 16, 128>}, {pipeline_mode = #tpu.pipeline_mode<synchronous>, transform_indices = @transform_2, window_bounds = array<i64: 128, 128>}, {pipeline_mode = #tpu.pipeline_mode<synchronous>, transform_indices = @transform_3, window_bounds = array<i64: 128, 128>}, {pipeline_mode = #tpu.pipeline_mode<synchronous>, transform_indices = @transform_4, window_bounds = array<i64: 3, 128>}, {transform_indices = @transform_5, window_bounds = array<i64: 8, 128>}]} {
    %c0 = arith.constant 0 : index
    %c0_0 = arith.constant 0 : index
    %0 = vector.load %arg6[%c0, %c0_0] : memref<3x128xf32, #tpu.memory_space<vmem>>, vector<3x128xf32>
    %c0_1 = arith.constant 0 : index
    %c0_2 = arith.constant 0 : index
    %1 = vector.load %arg2[%c0_1, %c0_2] : memref<8x16xf32, #tpu.memory_space<vmem>>, vector<8x16xf32>
    %2 = arith.truncf %1 : vector<8x16xf32> to vector<8x16xbf16>
    %c0_3 = arith.constant 0 : index
    %c0_4 = arith.constant 0 : index
    %3 = vector.load %arg3[%c0_3, %c0_4] : memref<16x128xbf16, #tpu.memory_space<vmem>>, vector<16x128xbf16>
    %cst = arith.constant dense<0.000000e+00> : vector<8x128xf32>
    %4 = tpu.matmul %2, %3, %cst {dimension_numbers = #tpu.dot_dimension_numbers<[1], [0], [0], [1], [0, 0, 1, 1], [], []>} : vector<8x16xbf16>, vector<16x128xbf16>, vector<8x128xf32> -> vector<8x128xf32>
    %5 = vector.extract_strided_slice %0 {offsets = [0, 0], sizes = [1, 128], strides = [1, 1]} : vector<3x128xf32> to vector<1x128xf32>
    %6 = vector.broadcast %5 : vector<1x128xf32> to vector<8x128xf32>
    %7 = arith.addf %4, %6 : vector<8x128xf32>
    %8 = math.tanh %7 : vector<8x128xf32>
    %9 = arith.truncf %8 : vector<8x128xf32> to vector<8x128xbf16>
    %c0_5 = arith.constant 0 : index
    %c0_6 = arith.constant 0 : index
    %10 = vector.load %arg4[%c0_5, %c0_6] : memref<128x128xbf16, #tpu.memory_space<vmem>>, vector<128x128xbf16>
    %cst_7 = arith.constant dense<0.000000e+00> : vector<8x128xf32>
    %11 = tpu.matmul %9, %10, %cst_7 {dimension_numbers = #tpu.dot_dimension_numbers<[1], [0], [0], [1], [0, 0, 1, 1], [], []>} : vector<8x128xbf16>, vector<128x128xbf16>, vector<8x128xf32> -> vector<8x128xf32>
    %12 = vector.extract_strided_slice %0 {offsets = [1, 0], sizes = [1, 128], strides = [1, 1]} : vector<3x128xf32> to vector<1x128xf32>
    %13 = vector.broadcast %12 : vector<1x128xf32> to vector<8x128xf32>
    %14 = arith.addf %11, %13 : vector<8x128xf32>
    %15 = math.tanh %14 : vector<8x128xf32>
    %16 = arith.truncf %15 : vector<8x128xf32> to vector<8x128xbf16>
    %c0_8 = arith.constant 0 : index
    %c0_9 = arith.constant 0 : index
    %17 = vector.load %arg5[%c0_8, %c0_9] : memref<128x128xbf16, #tpu.memory_space<vmem>>, vector<128x128xbf16>
    %cst_10 = arith.constant dense<0.000000e+00> : vector<8x128xf32>
    %18 = tpu.matmul %16, %17, %cst_10 {dimension_numbers = #tpu.dot_dimension_numbers<[1], [0], [0], [1], [0, 0, 1, 1], [], []>} : vector<8x128xbf16>, vector<128x128xbf16>, vector<8x128xf32> -> vector<8x128xf32>
    %19 = vector.extract_strided_slice %0 {offsets = [2, 0], sizes = [1, 128], strides = [1, 1]} : vector<3x128xf32> to vector<1x128xf32>
    %20 = vector.broadcast %19 : vector<1x128xf32> to vector<8x128xf32>
    %21 = arith.addf %18, %20 : vector<8x128xf32>
    %22 = tpu.iota {dimensions = array<i32: 1>} : vector<8x128xi32>
    %23 = tpu.iota {dimensions = array<i32: 0>} : vector<8x128xi32>
    %c8_i32 = arith.constant 8 : i32
    %24 = arith.muli %arg0, %c8_i32 : i32
    %25 = vector.broadcast %24 : i32 to vector<8x128xi32>
    %26 = arith.addi %23, %25 : vector<8x128xi32>
    %c-1640531535_i32 = arith.constant -1640531535 : i32
    %27 = vector.broadcast %c-1640531535_i32 : i32 to vector<8x128xi32>
    %28 = arith.muli %26, %27 : vector<8x128xi32>
    %c-2048144789_i32 = arith.constant -2048144789 : i32
    %29 = vector.broadcast %c-2048144789_i32 : i32 to vector<8x128xi32>
    %30 = arith.muli %22, %29 : vector<8x128xi32>
    %31 = arith.addi %28, %30 : vector<8x128xi32>
    %c0_11 = arith.constant 0 : index
    %32 = memref.load %arg1[%c0_11] : memref<1xi32, #tpu.memory_space<smem>>
    %c-1028477387_i32 = arith.constant -1028477387 : i32
    %33 = arith.muli %32, %c-1028477387_i32 : i32
    %34 = vector.broadcast %33 : i32 to vector<8x128xi32>
    %35 = arith.addi %31, %34 : vector<8x128xi32>
    %c16_i32 = arith.constant 16 : i32
    %36 = vector.broadcast %c16_i32 : i32 to vector<8x128xi32>
    %37 = arith.shrsi %35, %36 : vector<8x128xi32>
    %c65535_i32 = arith.constant 65535 : i32
    %38 = vector.broadcast %c65535_i32 : i32 to vector<8x128xi32>
    %39 = arith.andi %37, %38 : vector<8x128xi32>
    %40 = arith.xori %35, %39 : vector<8x128xi32>
    %c2146121005_i32 = arith.constant 2146121005 : i32
    %41 = vector.broadcast %c2146121005_i32 : i32 to vector<8x128xi32>
    %42 = arith.muli %40, %41 : vector<8x128xi32>
    %c15_i32 = arith.constant 15 : i32
    %43 = vector.broadcast %c15_i32 : i32 to vector<8x128xi32>
    %44 = arith.shrsi %42, %43 : vector<8x128xi32>
    %c131071_i32 = arith.constant 131071 : i32
    %45 = vector.broadcast %c131071_i32 : i32 to vector<8x128xi32>
    %46 = arith.andi %44, %45 : vector<8x128xi32>
    %47 = arith.xori %42, %46 : vector<8x128xi32>
    %c-2073254261_i32 = arith.constant -2073254261 : i32
    %48 = vector.broadcast %c-2073254261_i32 : i32 to vector<8x128xi32>
    %49 = arith.muli %47, %48 : vector<8x128xi32>
    %c16_i32_12 = arith.constant 16 : i32
    %50 = vector.broadcast %c16_i32_12 : i32 to vector<8x128xi32>
    %51 = arith.shrsi %49, %50 : vector<8x128xi32>
    %c65535_i32_13 = arith.constant 65535 : i32
    %52 = vector.broadcast %c65535_i32_13 : i32 to vector<8x128xi32>
    %53 = arith.andi %51, %52 : vector<8x128xi32>
    %54 = arith.xori %49, %53 : vector<8x128xi32>
    %c16777215_i32 = arith.constant 16777215 : i32
    %55 = vector.broadcast %c16777215_i32 : i32 to vector<8x128xi32>
    %56 = arith.andi %54, %55 : vector<8x128xi32>
    %57 = arith.sitofp %56 : vector<8x128xi32> to vector<8x128xf32>
    %cst_14 = arith.constant 5.000000e-01 : f32
    %58 = vector.broadcast %cst_14 : f32 to vector<8x128xf32>
    %59 = arith.addf %57, %58 : vector<8x128xf32>
    %cst_15 = arith.constant 5.96046448E-8 : f32
    %60 = vector.broadcast %cst_15 : f32 to vector<8x128xf32>
    %61 = arith.mulf %59, %60 : vector<8x128xf32>
    %62 = math.log %61 : vector<8x128xf32>
    %cst_16 = arith.constant 0.000000e+00 : f32
    %63 = vector.broadcast %cst_16 : f32 to vector<8x128xf32>
    %64 = arith.subf %63, %62 : vector<8x128xf32>
    %65 = math.log %64 : vector<8x128xf32>
    %cst_17 = arith.constant 0.000000e+00 : f32
    %66 = vector.broadcast %cst_17 : f32 to vector<8x128xf32>
    %67 = arith.subf %66, %65 : vector<8x128xf32>
    %68 = arith.addf %21, %67 : vector<8x128xf32>
    %69 = tpu.bitcast %68 : vector<8x128xf32> -> vector<8x128xi32>
    %c31_i32 = arith.constant 31 : i32
    %70 = vector.broadcast %c31_i32 : i32 to vector<8x128xi32>
    %71 = arith.shrsi %69, %70 : vector<8x128xi32>
    %c2147483647_i32 = arith.constant 2147483647 : i32
    %72 = vector.broadcast %c2147483647_i32 : i32 to vector<8x128xi32>
    %73 = arith.andi %71, %72 : vector<8x128xi32>
    %74 = arith.xori %69, %73 : vector<8x128xi32>
    %c6_i32 = arith.constant 6 : i32
    %75 = vector.broadcast %c6_i32 : i32 to vector<8x128xi32>
    %76 = arith.cmpi slt, %22, %75 : vector<8x128xi32>
    %c-128_i32 = arith.constant -128 : i32
    %77 = vector.broadcast %c-128_i32 : i32 to vector<8x128xi32>
    %78 = arith.andi %74, %77 : vector<8x128xi32>
    %c127_i32 = arith.constant 127 : i32
    %79 = vector.broadcast %c127_i32 : i32 to vector<8x128xi32>
    %80 = arith.subi %79, %22 : vector<8x128xi32>
    %81 = arith.ori %78, %80 : vector<8x128xi32>
    %c-2147483648_i32 = arith.constant -2147483648 : i32
    %82 = vector.broadcast %c-2147483648_i32 : i32 to vector<8x128xi32>
    %83 = arith.select %76, %81, %82 : vector<8x128xi1>, vector<8x128xi32>
    %cst_18 = arith.constant dense<-2147483648> : vector<8xi32>
    %84 = vector.multi_reduction <maxsi>, %83, %cst_18 [1] : vector<8x128xi32> to vector<8xi32>
    %85 = vector.shape_cast %84 : vector<8xi32> to vector<8x1xi32>
    %c127_i32_19 = arith.constant 127 : i32
    %86 = vector.broadcast %c127_i32_19 : i32 to vector<8x1xi32>
    %87 = arith.andi %85, %86 : vector<8x1xi32>
    %c127_i32_20 = arith.constant 127 : i32
    %88 = vector.broadcast %c127_i32_20 : i32 to vector<8x1xi32>
    %89 = arith.subi %88, %87 : vector<8x1xi32>
    %90 = arith.sitofp %89 : vector<8x1xi32> to vector<8x1xf32>
    %c65_i32 = arith.constant 65 : i32
    %91 = vector.broadcast %c65_i32 : i32 to vector<8x128xi32>
    %92 = arith.cmpi eq, %22, %91 : vector<8x128xi32>
    %93 = vector.shape_cast %90 : vector<8x1xf32> to vector<8x1xf32>
    %94 = vector.broadcast %93 : vector<8x1xf32> to vector<8x128xf32>
    %95 = arith.select %92, %94, %21 : vector<8x128xi1>, vector<8x128xf32>
    %c0_21 = arith.constant 0 : index
    %c0_22 = arith.constant 0 : index
    %96 = vector.load %arg7[%c0_21, %c0_22] : memref<8x128xf32, #tpu.memory_space<vmem>>, vector<8x128xf32>
    tpu.vector_store %arg7[%c0_21, %c0_22], %95 {strides = array<i32>} : memref<8x128xf32, #tpu.memory_space<vmem>>, vector<8x128xf32>,
    return
  }
  func.func @transform_0(%arg0: i32, %arg1: memref<1xi32, #tpu.memory_space<smem>>) -> (i32, i32) {
    %c0_i32 = arith.constant 0 : i32
    %c0_i32_0 = arith.constant 0 : i32
    return %arg0, %c0_i32 : i32, i32
  }
  func.func @transform_1(%arg0: i32, %arg1: memref<1xi32, #tpu.memory_space<smem>>) -> (i32, i32) {
    %c0_i32 = arith.constant 0 : i32
    %c0_i32_0 = arith.constant 0 : i32
    %c0_i32_1 = arith.constant 0 : i32
    return %c0_i32, %c0_i32_0 : i32, i32
  }
  func.func @transform_2(%arg0: i32, %arg1: memref<1xi32, #tpu.memory_space<smem>>) -> (i32, i32) {
    %c0_i32 = arith.constant 0 : i32
    %c0_i32_0 = arith.constant 0 : i32
    %c0_i32_1 = arith.constant 0 : i32
    return %c0_i32, %c0_i32_0 : i32, i32
  }
  func.func @transform_3(%arg0: i32, %arg1: memref<1xi32, #tpu.memory_space<smem>>) -> (i32, i32) {
    %c0_i32 = arith.constant 0 : i32
    %c0_i32_0 = arith.constant 0 : i32
    %c0_i32_1 = arith.constant 0 : i32
    return %c0_i32, %c0_i32_0 : i32, i32
  }
  func.func @transform_4(%arg0: i32, %arg1: memref<1xi32, #tpu.memory_space<smem>>) -> (i32, i32) {
    %c0_i32 = arith.constant 0 : i32
    %c0_i32_0 = arith.constant 0 : i32
    %c0_i32_1 = arith.constant 0 : i32
    return %c0_i32, %c0_i32_0 : i32, i32
  }
  func.func @transform_5(%arg0: i32, %arg1: memref<1xi32, #tpu.memory_space<smem>>) -> (i32, i32) {
    %c0_i32 = arith.constant 0 : i32
    %c0_i32_0 = arith.constant 0 : i32
    return %arg0, %c0_i32 : i32, i32
  }
}

</mosaic_0001>

<bundles_post_ra>
// kernel: actor_critic_forward.1
= control target key start
LH: loop header
LB: loop body
LE: loop exit
PB: predicated region body
PF: predicated region fallthrough
CT: control target
= control target key end

     0   :  { %12 = vsyncpa [#allocation5], 0  ;;  %s732_s0 = inlined_call_operand.<no memory space> [shape: s32[1], index: 0, kind: input, shape index: {}]   ;;  %s733_s1 = inlined_call_operand.hbm [shape: f32[8,16], index: 1, kind: input, shape index: {}]   ;;  %s734_s2 = inlined_call_operand.vmem [shape: bf16[16,128], index: 2, kind: input, shape index: {}]   ;;  %s735_s3 = inlined_call_operand.hbm [shape: bf16[128,128], index: 3, kind: input, shape index: {}]   ;;  %s736_s4 = inlined_call_operand.hbm [shape: bf16[128,128], index: 4, kind: input, shape index: {}]   ;;  %s737_s5 = inlined_call_operand.vmem [shape: f32[3,128], index: 5, kind: input, shape index: {}]   ;;  %s738_s6 = inlined_call_operand.vmem [shape: f32[8,128], index: 6, kind: output, shape index: {}]  }
   0x1   :  { %13 = vsyncpa [#allocation7], 0  ;;  %s601_s21 = smov [#allocation6]   ;;  %s531_s25 = scalar_lea.hbm %s735_s3, 1024 }
   0x2   :  { %s31_s22 = sshll.u32 %s601_s21, 4  ;;  %p532_p0 = scmp.ne.s32.totalorder %s735_s3, %s531_s25  ;;  %s32_s22 = int_to_ptr.vmem [resolvable:$true] %s31_s22 }
   0x3   :  { %p535_p1 = scmp.lt.u32.totalorder %s531_s25, %s735_s3 }
   0x5   :  { %p537_p2 = pnand %p535_p1, %p532_p0 }
   0x7   :  { %540 = shalt.err (!%p537_p2)
}
   0x8   :  { %s541_s30 = scalar_lea.vmem %s32_s22, 1024  ;;  %p546_p4 = scmp.lt.s32.totalorder %s32_s22, %s32_s22 }
   0x9   :  { %p542_p3 = scmp.ne.s32.totalorder %s32_s22, %s541_s30  ;;  %p547_p5 = scmp.lt.s32.totalorder %s541_s30, %s541_s30 }
   0xb   :  { %p548_p6 = por %p547_p5, %p546_p4 }
   0xd   :  { %p549_p7 = pnand %p548_p6, %p542_p3 }
   0xf   :  { %552 = shalt.err (!%p549_p7)
}
  0x10   :  { %s602_s7 = smov 64   ;;  %s603_s8 = smov 4  }
  0x11   :  { %37 = dma.hbm_to_vmem [thread:$0]  %s735_s3, 1024, %s32_s22, [#allocation7], %s602_s7, %s602_s7, %s603_s8  }
  0x12   :  { %s604_s11 = smov [#allocation4]   ;;  %s605_s13 = smov [#allocation8]  }
  0x13   :  { %s20_s12 = sshll.u32 %s604_s11, 4  ;;  %s43_s14 = sshll.u32 %s605_s13, 4  ;;  %s21_s12 = int_to_ptr.vmem [resolvable:$true] %s20_s12  ;;  %s44_s14 = int_to_ptr.vmem [resolvable:$true] %s43_s14 }
  0x14   :  { %s553_s17 = scalar_lea.hbm %s733_s1, 128 }
  0x15   :  { %p554_p8 = scmp.ne.s32.totalorder %s733_s1, %s553_s17  ;;  %p557_p9 = scmp.lt.u32.totalorder %s553_s17, %s733_s1 }
  0x17   :  { %p559_p10 = pnand %p557_p9, %p554_p8 }
  0x19   :  { %562 = shalt.err (!%p559_p10)
}
  0x1a   :  { %s563_s3 = scalar_lea.vmem %s21_s12, 128  ;;  %p568_p12 = scmp.lt.s32.totalorder %s21_s12, %s21_s12 }
  0x1b   :  { %p564_p11 = scmp.ne.s32.totalorder %s21_s12, %s563_s3  ;;  %p569_p13 = scmp.lt.s32.totalorder %s563_s3, %s563_s3 }
  0x1d   :  { %p570_p0 = por %p569_p13, %p568_p12 }
  0x1f   :  { %p571_p1 = pnand %p570_p0, %p564_p11 }
  0x21   :  { %574 = shalt.err (!%p571_p1)
}
  0x22   :  { %23 = dma.hbm_to_vmem [thread:$0]  %s733_s1, 128, %s21_s12, [#allocation5]  }
  0x23   :  { %s575_s26 = scalar_lea.hbm %s736_s4, 1024 }
  0x24   :  { %p576_p2 = scmp.ne.s32.totalorder %s736_s4, %s575_s26  ;;  %p579_p3 = scmp.lt.u32.totalorder %s575_s26, %s736_s4 }
  0x26   :  { %p581_p4 = pnand %p579_p3, %p576_p2 }
  0x28   :  { %584 = shalt.err (!%p581_p4)
}
  0x29   :  { %s585_s9 = scalar_lea.vmem %s44_s14, 1024  ;;  %p590_p6 = scmp.lt.s32.totalorder %s44_s14, %s44_s14 }
  0x2a   :  { %p586_p5 = scmp.ne.s32.totalorder %s44_s14, %s585_s9  ;;  %p591_p7 = scmp.lt.s32.totalorder %s585_s9, %s585_s9 }
  0x2c   :  { %p592_p8 = por %p591_p7, %p590_p6 }
  0x2e   :  { %p593_p9 = pnand %p592_p8, %p586_p5 }
  0x30   :  { %596 = shalt.err (!%p593_p9)
}
  0x31   :  { %49 = dma.hbm_to_vmem [thread:$0]  %s736_s4, 1024, %s44_s14, [#allocation7], %s602_s7, %s602_s7, %s603_s8  }
  0x32   :  { %597 = dma.done.wait [#allocation5], 128  }
  0x33   :  { %598 = vsyncadd [#allocation5], 4294967168 }
  0x34   :  { %599 = dma.done.wait [#allocation7], 2048  }
  0x35   :  { %600 = vsyncadd [#allocation7], 4294965248  ;;  %v606_v0 = vmov 0.0   ;;  %vm607_vm0 = vmmov 0   ;;  %v506_v1 = vld [vmem:[%s734_s2] sm:$0xff]   ;;  %vm77_vm1 = vcmask 130048   ;;  %v67_v16 = vlaneseq }
  0x36   :  { %453 = vmatprep.subr.bf16.mxu0 %v606_v0  ;;  %455 = vmatprep.mubr.msk.bf16.mxu0 %vm607_vm0, %v606_v0  ;;  %v63_v2 = vld [vmem:[#allocation4] sm:$0xff]  ;;  %v507_v4 = vld [vmem:[#allocation6] sm:$0xff]   ;;  %v508_v5 = vld [vmem:[#allocation6 + $0x8] sm:$0xff]   ;;  %s352_s8 = smul.u32 3266489909, %s732_s0 }
  0x37   :  { %459 = vmatprep.subr.bf16.mxu1 %v606_v0  ;;  %475 = vmatprep.mubr.msk.bf16.mxu1 %vm607_vm0, %v606_v0  ;;  %v64_v3 = vpack.c.bf16 %v63_v2, %v63_v2  ;;  %v509_v6 = vld [vmem:[#allocation6 + $0x10] sm:$0xff]   ;;  %v510_v7 = vld [vmem:[#allocation6 + $0x18] sm:$0xff]   ;;  %v511_v8 = vld [vmem:[#allocation6 + $0x20] sm:$0xff]   ;;  %v708_v17 = vshrl.u32 %v67_v16, 7  ;;  %v718_v41 = vand.u32 127, %v67_v16 }
  0x38   :  { %454 = vmatpush3.bf16.msra.mxu0 %v506_v1  ;;  %460 = vmatpush3.bf16.msra.mxu1 %v507_v4  ;;  %v512_v9 = vld [vmem:[#allocation6 + $0x28] sm:$0xff]   ;;  %v513_v10 = vld [vmem:[#allocation6 + $0x30] sm:$0xff]   ;;  %v514_v11 = vld [vmem:[#allocation6 + $0x38] sm:$0xff]   ;;  %v353_v45 = vstv %s352_s8 }
  0x39   :  { %479 = vmatprep.subr.bf16.mxu0 %v606_v0  ;;  %461 = vmatprep.subr.bf16.mxu1 %v606_v0  ;;  %v515_v12 = vld [vmem:[#allocation8] sm:$0xff]   ;;  %v516_v13 = vld [vmem:[#allocation8 + $0x8] sm:$0xff]   ;;  %v517_v14 = vld [vmem:[#allocation8 + $0x10] sm:$0xff]   ;;  %v69_v18 = vsub.s32 0, %v708_v17  ;;  %v141_v32 = vsub.s32 1, %v708_v17  ;;  %v251_v63 = vsub.s32 2, %v708_v17 }
  0x3a   :  { %v518_v15 = vld [vmem:[#allocation8 + $0x18] sm:$0xff]   ;;  %v519_v28 = vld [vmem:[#allocation8 + $0x20] sm:$0xff]   ;;  %v520_v29 = vld [vmem:[#allocation8 + $0x28] sm:$0xff]   ;;  %v348_v42 = vmul.u32 2654435761, %v708_v17  ;;  %vm381_vm2 = vcmp.lt.s32.totalorder %v718_v41, 6 }
  0x3b   :  { %456 = vmatmul.mubr.msk.bf16.vlgmr.msra.gmra.mrb[0].mxu0 %vm77_vm1, %v64_v3  ;;  %v62_v19 = vld [vmem:[%s737_s5] sm:$0x7]  ;;  %v521_v30 = vld [vmem:[#allocation8 + $0x30] sm:$0xff]   ;;  %v349_v43 = vmul.u32 2246822507, %v718_v41  ;;  %vm403_vm4 = vcmp.eq.s32.totalorder %v718_v41, 65 }
  0x3c   :  { %495 = vmatprep.mubr.msk.bf16.mxu0 %vm607_vm0, %v606_v0  ;;  %462 = vmatpush3.bf16.msra.mxu1 %v508_v5  ;;  %v70_v20 = vrot.slane %v62_v19, %v69_v18  ;;  %v522_v31 = vld [vmem:[#allocation8 + $0x38] sm:$0xff]   ;;  %v142_v33 = vrot.slane %v62_v19, %v141_v32  ;;  %v252_v1 = vrot.slane %v62_v19, %v251_v63 }
  0x3d   :  { %463 = vmatprep.subr.bf16.mxu1 %v606_v0  ;;  %480 = vmatpush3.bf16.msra.mxu0 %v515_v12  ;;  %v350_v44 = vadd.s32 %v349_v43, %v348_v42  ;;  %v383_v12 = vsub.s32 127, %v718_v41 }
  0x3e   :  { %481 = vmatprep.subr.bf16.mxu0 %v606_v0 }
  0x3f   :  { %v354_v46 = vadd.s32 %v353_v45, %v350_v44 }
  0x40   :  { %464 = vmatpush3.bf16.msra.mxu1 %v509_v6 }
  0x41   :  { %465 = vmatprep.subr.bf16.mxu1 %v606_v0  ;;  %482 = vmatpush3.bf16.msra.mxu0 %v516_v13  ;;  %v430_v47 = vshrl.u32 %v354_v46, 16 }
  0x42   :  { %483 = vmatprep.subr.bf16.mxu0 %v606_v0 }
  0x43   :  { %v357_v48 = vxor.u32 %v430_v47, %v354_v46 }
  0x44   :  { %466 = vmatpush3.bf16.msra.mxu1 %v510_v7 }
  0x45   :  { %467 = vmatprep.subr.bf16.mxu1 %v606_v0  ;;  %484 = vmatpush3.bf16.msra.mxu0 %v517_v14  ;;  %v358_v49 = vmul.u32 2146121005, %v357_v48 }
  0x46   :  { %485 = vmatprep.subr.bf16.mxu0 %v606_v0 }
  0x47   :  { %v431_v50 = vshrl.u32 %v358_v49, 15 }
  0x48   :  { %468 = vmatpush3.bf16.msra.mxu1 %v511_v8 }
  0x49   :  { %469 = vmatprep.subr.bf16.mxu1 %v606_v0  ;;  %486 = vmatpush3.bf16.msra.mxu0 %v518_v15  ;;  %v361_v51 = vxor.u32 %v431_v50, %v358_v49 }
  0x4a   :  { %487 = vmatprep.subr.bf16.mxu0 %v606_v0 }
  0x4b   :  { %v362_v52 = vmul.u32 2221713035, %v361_v51 }
  0x4c   :  { %470 = vmatpush3.bf16.msra.mxu1 %v512_v9 }
  0x4d   :  { %471 = vmatprep.subr.bf16.mxu1 %v606_v0  ;;  %488 = vmatpush3.bf16.msra.mxu0 %v519_v28  ;;  %v432_v53 = vshrl.u32 %v362_v52, 16 }
  0x4e   :  { %489 = vmatprep.subr.bf16.mxu0 %v606_v0 }
  0x4f   :  { %v365_v54 = vxor.u32 %v432_v53, %v362_v52 }
  0x50   :  { %472 = vmatpush3.bf16.msra.mxu1 %v513_v10 }
  0x51   :  { %473 = vmatprep.subr.bf16.mxu1 %v606_v0  ;;  %490 = vmatpush3.bf16.msra.mxu0 %v520_v29  ;;  %v366_v55 = vand.u32 16777215, %v365_v54 }
  0x52   :  { %491 = vmatprep.subr.bf16.mxu0 %v606_v0 }
  0x53   :  { %v367_v56 = vcvt.s32.f32 %v366_v55 }
  0x54   :  { %474 = vmatpush3.bf16.msra.mxu1 %v514_v11 }
  0x55   :  { %492 = vmatpush3.bf16.msra.mxu0 %v521_v30  ;;  %v368_v57 = vadd.f32 0.5, %v367_v56 }
  0x56   :  { %493 = vmatprep.subr.bf16.mxu0 %v606_v0 }
  0x57   :  { %v369_v58 = vmul.f32 5.9604645e-08, %v368_v57 }
  0x59   :  { %494 = vmatpush3.bf16.msra.mxu0 %v522_v31 }
 0x10e   :  { %v115_v21 = vpop.f32.mrb[0].mxu0 }
 0x10f   :  { %v116_v22 = vadd.f32 %v115_v21, %v70_v20  ;;  %v457_v23 = vpop.f32.mrb[1].mxu0 }
 0x110   :  { %v118_v24 = vpop.f32.mrb[2].mxu0 }
 0x111   :  { %523 = vtanh.f32 %v116_v22  ;;  %v458_v25 = vpop.f32.mrb[3].mxu0 }
 0x11b   :  { %v524_v26 = vpop.eup %523 }
 0x11c   :  { %v122_v27 = vpack.c.bf16 %v524_v26, %v524_v26 }
 0x11e   :  { %476 = vmatmul.mubr.bf16.vlgmr.msra.gmra.mrb[0].mxu1 %v122_v27 }
 0x1f1   :  { %v225_v34 = vpop.f32.mrb[0].mxu1 }
 0x1f2   :  { %v226_v35 = vadd.f32 %v225_v34, %v142_v33  ;;  %v477_v36 = vpop.f32.mrb[1].mxu1 }
 0x1f3   :  { %v228_v37 = vpop.f32.mrb[2].mxu1 }
 0x1f4   :  { %525 = vtanh.f32 %v226_v35  ;;  %v478_v38 = vpop.f32.mrb[3].mxu1 }
 0x1f5   :  { %527 = vlog2.f32 %v369_v58 }
 0x1fe   :  { %v526_v39 = vpop.eup %525 }
 0x1ff   :  { %v232_v40 = vpack.c.bf16 %v526_v39, %v526_v39  ;;  %v528_v59 = vpop.eup %527 }
 0x200   :  { %v371_v60 = vmul.f32 0.6931472, %v528_v59 }
 0x201   :  { %496 = vmatmul.mubr.bf16.vlgmr.msra.gmra.mrb[4].mxu0 %v232_v40 }
 0x202   :  { %v372_v61 = vsub.f32 0.0, %v371_v60 }
 0x204   :  { %529 = vlog2.f32 %v372_v61 }
 0x20e   :  { %v530_v62 = vpop.eup %529 }
 0x20f   :  { %v374_v0 = vmul.f32 0.6931472, %v530_v62 }
 0x211   :  { %v375_v2 = vsub.f32 0.0, %v374_v0 }
 0x2d4   :  { %v335_v3 = vpop.f32.mrb[4].mxu0 }
 0x2d5   :  { %v336_v4 = vadd.f32 %v335_v3, %v252_v1  ;;  %v497_v5 = vpop.f32.mrb[5].mxu0 }
 0x2d6   :  { %v338_v6 = vpop.f32.mrb[6].mxu0 }
 0x2d7   :  { %v376_v7 = vadd.f32 %v375_v2, %v336_v4  ;;  %v498_v8 = vpop.f32.mrb[7].mxu0 }
 0x2d9   :  { %v378_v9 = vshra.s32 %v376_v7, 31 }
 0x2db   :  { %v379_v10 = vand.u32 2147483647, %v378_v9 }
 0x2dd   :  { %v380_v11 = vxor.u32 %v379_v10, %v376_v7 }
 0x2df   :  { %v382_v13 = vand.u32 4294967168, %v380_v11 }
 0x2e1   :  { %v384_v14 = vor.u32 %v383_v12, %v382_v13 }
 0x2e3   :  { %v385_v15 = vsel %vm381_vm2, %v384_v14, 2147483648 }
 0x2e4   :  { %v387_v16 = vshra.s32 %v385_v15, 16  ;;  %v386_v18 = vand.u32 65535, %v385_v15 }
 0x2e6   :  { %v389_v17 = vcvt.s32.f32 %v387_v16  ;;  %v388_v20 = vcvt.s32.f32 %v386_v18 }
 0x2e8   :  { %390 = vmax.xlane.f32.xlu0 %v389_v17 }
 0x375   :  { %v391_v19 = vpop.xlane.xlu0 %390 }
 0x376   :  { %vm392_vm3 = vcmp.eq.f32.partialorder %v389_v17, %v391_v19  ;;  %v397_v22 = vcvt.f32.s32 %v391_v19 }
 0x377   :  { %v393_v21 = vsel %vm392_vm3, %v388_v20, -inf }
 0x378   :  { %394 = vmax.xlane.f32.xlu0 %v393_v21  ;;  %v398_v24 = vshll.u32 %v397_v22, 16 }
 0x405   :  { %v395_v23 = vpop.xlane.xlu0 %394 }
 0x406   :  { %v396_v25 = vcvt.f32.s32 %v395_v23 }
 0x408   :  { %v399_v26 = vadd.s32 %v398_v24, %v396_v25 }
 0x40a   :  { %v400_v27 = vand.u32 127, %v399_v26 }
 0x40c   :  { %v401_v28 = vsub.s32 127, %v400_v27 }
 0x40e   :  { %v402_v29 = vcvt.s32.f32 %v401_v28 }
 0x410   :  { %v404_v30 = vsel %vm403_vm4, %v402_v29, %v336_v4 }
 0x411   :  { %405 = vst [vmem:[%s738_s6] sm:$0xff] %v404_v30 }
 0x412   :  { %410 = vsyncpa [#allocation5], 1 }
 0x413   :  { %411 = vsyncpa [#allocation7], 1 }

</bundles_post_ra>
